<compile_context>
chip_gen: v5e
topology: v5e:2x2
jax: 0.10.0
libtpu: 0.0.40
codegen_flags: <defaults>
</compile_context>

<pallas_src>
import functools
import math

import jax
import jax.numpy as jnp
import numpy as np
from jax.experimental import pallas as pl
from jax.experimental.pallas import tpu as pltpu

_LANE = 128


def _round_up(v, m):
    return ((v + m - 1) // m) * m


def _channel_conv_gate(pooled, w_ref, k, pad):
    """k-tap Conv1d across channels (zero padded) followed by sigmoid.

    pooled: (C, 1) f32 column (channels on the sublane axis).
    w_ref:  (k,) f32 SMEM ref holding the Conv1d weight.
    """
    c = pooled.shape[0]
    ch = jax.lax.broadcasted_iota(jnp.int32, (c, 1), 0)
    y = jnp.zeros((c, 1), jnp.float32)
    for j in range(k):                      # k is tiny & static -> fully unrolled
        d = j - pad
        shifted = pltpu.roll(pooled, shift=(-d) % c, axis=0)   # s[c] = pooled[c+d]
        valid = jnp.logical_and(ch + d >= 0, ch + d < c)       # Conv1d zero padding
        y = y + w_ref[j] * jnp.where(valid, shifted, 0.0)
    # sigmoid(y) = 0.5 * (1 + tanh(y/2)): numerically stable, runs on the EUP.
    return 0.5 * (jnp.tanh(0.5 * y) + 1.0)


# --------------- fused single-pass path (small / mid C*HW blocks) ------------

def _eca_fused_kernel(w_ref, x_ref, o_ref, *, nb, inv_hw, k, pad):
    # x_ref/o_ref block: (nb, C, HW) in the native dtype; nb is static & small.
    for b in range(nb):
        pooled = jnp.sum(x_ref[b], axis=-1, keepdims=True,
                         dtype=jnp.float32) * inv_hw            # (C,1) f32 accum
        gate = _channel_conv_gate(pooled, w_ref, k, pad)        # (C,1) f32
        # Gate multiply in the native dtype: no full-block f32 temporary.
        o_ref[b] = x_ref[b] * gate.astype(o_ref.dtype)


# --------------- two-pass path (bounded VMEM per grid step) ------------------

def _eca_pool_kernel(w_ref, x_ref, g_ref, *, hw, hw_tile, k, pad):
    t = pl.program_id(1)

    @pl.when(t == 0)
    def _():
        g_ref[...] = jnp.zeros_like(g_ref)

    rem = hw % hw_tile
    if rem == 0:
        g_ref[0] = g_ref[0] + jnp.sum(x_ref[0], axis=-1, keepdims=True,
                                      dtype=jnp.float32)
    else:
        last = pl.num_programs(1) - 1

        @pl.when(t < last)
        def _():
            g_ref[0] = g_ref[0] + jnp.sum(x_ref[0], axis=-1, keepdims=True,
                                          dtype=jnp.float32)

        @pl.when(t == last)
        def _():
            # Partial last tile: mask the out-of-bounds lanes (their contents
            # are unspecified) before accumulating.
            xb = x_ref[0]
            lane = jax.lax.broadcasted_iota(jnp.int32, xb.shape, 1)
            xm = jnp.where(lane < rem, xb, jnp.zeros_like(xb))
            g_ref[0] = g_ref[0] + jnp.sum(xm, axis=-1, keepdims=True,
                                          dtype=jnp.float32)

    @pl.when(t == pl.num_programs(1) - 1)
    def _():
        pooled = g_ref[0] * (1.0 / hw)
        g_ref[0] = _channel_conv_gate(pooled, w_ref, k, pad)


def _eca_scale_kernel(g_ref, x_ref, o_ref):
    # Native-dtype gate multiply; OOB tail lanes of the last tile are simply
    # not written back by Pallas.
    o_ref[0] = x_ref[0] * g_ref[0].astype(o_ref.dtype)


# ----------------------------- wrapper ---------------------------------------

def _tpu_budgets():
    try:
        vmem_cap = int(getattr(pltpu.get_tpu_info(), "vmem_capacity_bytes"))
    except Exception:
        vmem_cap = 64 << 20                       # conservative fallback (v7x-sized)
    small = vmem_cap <= (64 << 20)                # v7x-like: half the VMEM, 2 TCs
    return dict(
        small_vmem=small,
        fuse_limit=(8 << 20) if small else (16 << 20),        # per-image fused cap
        fused_block_target=(4 << 20) if small else (8 << 20),  # packed block size
        tile_target=(3 << 20) if small else (6 << 20),          # two-pass x tile
        vmem_request_cap=int(0.75 * vmem_cap),
    )


def eca_forward(x, conv_w, *, force_two_pass=False, hw_tile=None, batch_block=None):
    """x: (N, C, H, W) float dtype (f32/bf16); conv_w: (k,) Conv1d weight."""
    n, c, h, w = x.shape
    hw = h * w
    k = int(conv_w.shape[0])
    pad = (k - 1) // 2
    dtype = x.dtype
    itemsize = jnp.dtype(dtype).itemsize

    conv_w = conv_w.astype(jnp.float32).reshape(-1)
    x_flat = x.reshape(n, c, hw)                  # metadata-only reshape

    budget = _tpu_budgets()
    per_image = c * hw * itemsize

    use_fused = (not force_two_pass) and per_image <= budget["fuse_limit"]
    # On 2-TC chips (v7x-like) a batch-1 fused grid is a single step -> one core
    # idle; for large maps prefer the two-pass path whose (n, n_t) grid splits.
    if use_fused and budget["small_vmem"] and n == 1 and per_image >= (1 << 20):
        use_fused = False

    def _vmem_limit(block_bytes):
        # 2x double-buffered input + 2x double-buffered output + slack.
        need = 4 * block_bytes + (4 << 20)
        return int(min(budget["vmem_request_cap"], max(need, 16 << 20)))

    if use_fused:
        if batch_block is None:
            nb = max(1, budget["fused_block_target"] // max(1, per_image))
        else:
            nb = max(1, int(batch_block))
        nb = min(nb, n, 32)                       # cap static unroll of gate code
        if budget["small_vmem"] and n > 1:
            nb = min(nb, pl.cdiv(n, 2))           # keep >= 2 steps -> both TCs busy
        n_blk = pl.cdiv(n, nb)
        blk_bytes = nb * per_image

        out_flat = pl.pallas_call(
            functools.partial(_eca_fused_kernel, nb=nb, inv_hw=1.0 / hw,
                              k=k, pad=pad),
            out_shape=jax.ShapeDtypeStruct((n, c, hw), dtype),
            grid=(n_blk,),
            in_specs=[
                pl.BlockSpec(memory_space=pltpu.MemorySpace.SMEM),
                pl.BlockSpec((nb, c, hw), lambda i: (i, 0, 0)),
            ],
            out_specs=pl.BlockSpec((nb, c, hw), lambda i: (i, 0, 0)),
            compiler_params=pltpu.CompilerParams(
                dimension_semantics=("parallel",),
                vmem_limit_bytes=_vmem_limit(blk_bytes)),
        )(conv_w, x_flat)
    else:
        if hw_tile is None:
            hw_tile = max(_LANE,
                          (budget["tile_target"] // max(1, c * itemsize))
                          // _LANE * _LANE)
        else:
            hw_tile = max(_LANE, (int(hw_tile) // _LANE) * _LANE)
        hw_tile = min(hw_tile, _round_up(hw, _LANE))
        if hw_tile >= hw:
            hw_tile = hw                          # full (possibly unaligned) dim
        n_t = pl.cdiv(hw, hw_tile)
        blk_bytes = c * hw_tile * itemsize
        vmem_limit = _vmem_limit(blk_bytes)

        # Pass 1: global average pool (HW-tile reduction) + channel conv + sigmoid.
        gate = pl.pallas_call(
            functools.partial(_eca_pool_kernel, hw=hw, hw_tile=hw_tile,
                              k=k, pad=pad),
            out_shape=jax.ShapeDtypeStruct((n, c, 1), jnp.float32),
            grid=(n, n_t),
            in_specs=[
                pl.BlockSpec(memory_space=pltpu.MemorySpace.SMEM),
                pl.BlockSpec((1, c, hw_tile), lambda i, t: (i, 0, t)),
            ],
            out_specs=pl.BlockSpec((1, c, 1), lambda i, t: (i, 0, 0)),
            compiler_params=pltpu.CompilerParams(
                dimension_semantics=("parallel", "arbitrary"),
                vmem_limit_bytes=vmem_limit),
        )(conv_w, x_flat)

        # Pass 2: broadcast gate-multiply, fully parallel grid.
        out_flat = pl.pallas_call(
            _eca_scale_kernel,
            out_shape=jax.ShapeDtypeStruct((n, c, hw), dtype),
            grid=(n, n_t),
            in_specs=[
                pl.BlockSpec((1, c, 1), lambda i, t: (i, 0, 0)),
                pl.BlockSpec((1, c, hw_tile), lambda i, t: (i, 0, t)),
            ],
            out_specs=pl.BlockSpec((1, c, hw_tile), lambda i, t: (i, 0, t)),
            compiler_params=pltpu.CompilerParams(
                dimension_semantics=("parallel", "parallel"),
                vmem_limit_bytes=vmem_limit),
        )(gate, x_flat)

    return out_flat.reshape(n, c, h, w)


# ----------------------------- reference -------------------------------------

def eca_reference(x, conv_w):
    """Pure-JAX reference mirroring the PyTorch forward."""
    n, c, h, w = x.shape
    k = conv_w.shape[0]
    pad = (k - 1) // 2
    xf = x.astype(jnp.float32)
    pooled = jnp.mean(xf, axis=(2, 3))                     # (N, C)
    padded = jnp.pad(pooled, ((0, 0), (pad, pad)))         # Conv1d zero padding
    y = jnp.zeros_like(pooled)
    for j in range(k):
        y = y + conv_w[j] * padded[:, j:j + c]
    gate = jax.nn.sigmoid(y)[:, :, None, None]
    return (xf * gate).astype(x.dtype)


def _k_size(c, gamma=2, bias=1):
    t = int(abs((math.log(c, 2) + bias) / gamma))
    return t if t % 2 else t + 1


if __name__ == "__main__":
    key = jax.random.PRNGKey(0)

    def make_inputs(subkey, n, c, h, w, dtype):
        k_size = _k_size(c)
        kx, kw = jax.random.split(subkey)
        x = jax.random.normal(kx, (n, c, h, w), dtype=jnp.float32).astype(dtype)
        bound = 1.0 / math.sqrt(k_size)
        conv_w = jax.random.uniform(kw, (k_size,), dtype=jnp.float32,
                                    minval=-bound, maxval=bound)
        return x, conv_w

    k1, k2, k3, k4 = jax.random.split(key, 4)

    # 1) fused path, f32, lane-aligned HW (module's nominal small shape).
    x, w_ = make_inputs(k1, 2, 16, 16, 16, jnp.float32)
    out = jax.block_until_ready(eca_forward(x, w_))
    np.testing.assert_allclose(np.asarray(out), np.asarray(eca_reference(x, w_)),
                               rtol=1e-5, atol=1e-5)

    # 2) fused path, bf16, non-lane-aligned HW (14x14=196): masked tail store,
    #    native-dtype gate multiply.
    x, w_ = make_inputs(k2, 2, 16, 14, 14, jnp.bfloat16)
    out = jax.block_until_ready(eca_forward(x, w_))
    ref = eca_reference(x, w_)
    np.testing.assert_allclose(np.asarray(out.astype(jnp.float32)),
                               np.asarray(ref.astype(jnp.float32)),
                               rtol=2e-2, atol=2e-2)

    # 3) two-pass path with a partial last HW tile (900 = 3*256 + 132): exercises
    #    the in-kernel reduction masking.
    x, w_ = make_inputs(k3, 1, 8, 30, 30, jnp.float32)
    out = jax.block_until_ready(
        eca_forward(x, w_, force_two_pass=True, hw_tile=256))
    np.testing.assert_allclose(np.asarray(out), np.asarray(eca_reference(x, w_)),
                               rtol=1e-5, atol=1e-5)

    # 4) fused path with batch packing and a partial batch block (n=3, nb=2).
    x, w_ = make_inputs(k4, 3, 16, 16, 16, jnp.float32)
    out = jax.block_until_ready(eca_forward(x, w_, batch_block=2))
    np.testing.assert_allclose(np.asarray(out), np.asarray(eca_reference(x, w_)),
                               rtol=1e-5, atol=1e-5)

    print("KERNEL_OK")
</pallas_src>

<mosaic_0001>
module attributes {stable_mosaic.version = 11 : i64} {
  func.func @_eca_fused_kernel(%arg0: i32, %arg1: memref<3xf32, #tpu.memory_space<smem>>, %arg2: memref<1x16x256xf32, #tpu.memory_space<vmem>>, %arg3: memref<1x16x256xf32, #tpu.memory_space<vmem>>) attributes {dimension_semantics = [#tpu.dimension_semantics<parallel>], iteration_bounds = array<i64: 2>, scalar_prefetch = 0 : i64, scratch_operands = 0 : i64, tpu.core_type = #tpu.core_type<tc>, window_params = [{transform_indices = @transform_0, window_bounds = array<i64: 3>}, {transform_indices = @transform_1, window_bounds = array<i64: 1, 16, 256>}, {transform_indices = @transform_2, window_bounds = array<i64: 1, 16, 256>}]} {
    %c0 = arith.constant 0 : index
    %c0_0 = arith.constant 0 : index
    %c0_1 = arith.constant 0 : index
    %0 = vector.load %arg2[%c0, %c0_0, %c0_1] : memref<1x16x256xf32, #tpu.memory_space<vmem>>, vector<1x16x256xf32>
    %1 = vector.shape_cast %0 : vector<1x16x256xf32> to vector<16x256xf32>
    %cst = arith.constant dense<0.000000e+00> : vector<16xf32>
    %2 = vector.multi_reduction <add>, %1, %cst [1] : vector<16x256xf32> to vector<16xf32>
    %3 = vector.shape_cast %2 : vector<16xf32> to vector<16x1xf32>
    %cst_2 = arith.constant 3.906250e-03 : f32
    %4 = vector.broadcast %cst_2 : f32 to vector<16x1xf32>
    %5 = arith.mulf %3, %4 : vector<16x1xf32>
    %6 = tpu.iota {dimensions = array<i32: 0>} : vector<16x1xi32>
    %cst_3 = arith.constant 0.000000e+00 : f32
    %7 = vector.broadcast %cst_3 : f32 to vector<16x1xf32>
    %c1_i32 = arith.constant 1 : i32
    %8 = tpu.dynamic_rotate %5 by %c1_i32 dim 0 : vector<16x1xf32>, i32 -> vector<16x1xf32>
    %c-1_i32 = arith.constant -1 : i32
    %9 = vector.broadcast %c-1_i32 : i32 to vector<16x1xi32>
    %10 = arith.addi %6, %9 : vector<16x1xi32>
    %c0_i32 = arith.constant 0 : i32
    %11 = vector.broadcast %c0_i32 : i32 to vector<16x1xi32>
    %12 = arith.cmpi sge, %10, %11 : vector<16x1xi32>
    %c-1_i32_4 = arith.constant -1 : i32
    %13 = vector.broadcast %c-1_i32_4 : i32 to vector<16x1xi32>
    %14 = arith.addi %6, %13 : vector<16x1xi32>
    %c16_i32 = arith.constant 16 : i32
    %15 = vector.broadcast %c16_i32 : i32 to vector<16x1xi32>
    %16 = arith.cmpi slt, %14, %15 : vector<16x1xi32>
    %17 = arith.andi %12, %16 : vector<16x1xi1>
    %c0_5 = arith.constant 0 : index
    %18 = memref.load %arg1[%c0_5] : memref<3xf32, #tpu.memory_space<smem>>
    %cst_6 = arith.constant 0.000000e+00 : f32
    %19 = vector.broadcast %cst_6 : f32 to vector<16x1xf32>
    %20 = arith.select %17, %8, %19 : vector<16x1xi1>, vector<16x1xf32>
    %21 = vector.broadcast %18 : f32 to vector<16x1xf32>
    %22 = arith.mulf %21, %20 : vector<16x1xf32>
    %23 = arith.addf %7, %22 : vector<16x1xf32>
    %c0_i32_7 = arith.constant 0 : i32
    %24 = tpu.dynamic_rotate %5 by %c0_i32_7 dim 0 : vector<16x1xf32>, i32 -> vector<16x1xf32>
    %c0_i32_8 = arith.constant 0 : i32
    %25 = vector.broadcast %c0_i32_8 : i32 to vector<16x1xi32>
    %26 = arith.addi %6, %25 : vector<16x1xi32>
    %c0_i32_9 = arith.constant 0 : i32
    %27 = vector.broadcast %c0_i32_9 : i32 to vector<16x1xi32>
    %28 = arith.cmpi sge, %26, %27 : vector<16x1xi32>
    %c0_i32_10 = arith.constant 0 : i32
    %29 = vector.broadcast %c0_i32_10 : i32 to vector<16x1xi32>
    %30 = arith.addi %6, %29 : vector<16x1xi32>
    %c16_i32_11 = arith.constant 16 : i32
    %31 = vector.broadcast %c16_i32_11 : i32 to vector<16x1xi32>
    %32 = arith.cmpi slt, %30, %31 : vector<16x1xi32>
    %33 = arith.andi %28, %32 : vector<16x1xi1>
    %c1 = arith.constant 1 : index
    %34 = memref.load %arg1[%c1] : memref<3xf32, #tpu.memory_space<smem>>
    %cst_12 = arith.constant 0.000000e+00 : f32
    %35 = vector.broadcast %cst_12 : f32 to vector<16x1xf32>
    %36 = arith.select %33, %24, %35 : vector<16x1xi1>, vector<16x1xf32>
    %37 = vector.broadcast %34 : f32 to vector<16x1xf32>
    %38 = arith.mulf %37, %36 : vector<16x1xf32>
    %39 = arith.addf %23, %38 : vector<16x1xf32>
    %c15_i32 = arith.constant 15 : i32
    %40 = tpu.dynamic_rotate %5 by %c15_i32 dim 0 : vector<16x1xf32>, i32 -> vector<16x1xf32>
    %c1_i32_13 = arith.constant 1 : i32
    %41 = vector.broadcast %c1_i32_13 : i32 to vector<16x1xi32>
    %42 = arith.addi %6, %41 : vector<16x1xi32>
    %c0_i32_14 = arith.constant 0 : i32
    %43 = vector.broadcast %c0_i32_14 : i32 to vector<16x1xi32>
    %44 = arith.cmpi sge, %42, %43 : vector<16x1xi32>
    %c1_i32_15 = arith.constant 1 : i32
    %45 = vector.broadcast %c1_i32_15 : i32 to vector<16x1xi32>
    %46 = arith.addi %6, %45 : vector<16x1xi32>
    %c16_i32_16 = arith.constant 16 : i32
    %47 = vector.broadcast %c16_i32_16 : i32 to vector<16x1xi32>
    %48 = arith.cmpi slt, %46, %47 : vector<16x1xi32>
    %49 = arith.andi %44, %48 : vector<16x1xi1>
    %c2 = arith.constant 2 : index
    %50 = memref.load %arg1[%c2] : memref<3xf32, #tpu.memory_space<smem>>
    %cst_17 = arith.constant 0.000000e+00 : f32
    %51 = vector.broadcast %cst_17 : f32 to vector<16x1xf32>
    %52 = arith.select %49, %40, %51 : vector<16x1xi1>, vector<16x1xf32>
    %53 = vector.broadcast %50 : f32 to vector<16x1xf32>
    %54 = arith.mulf %53, %52 : vector<16x1xf32>
    %55 = arith.addf %39, %54 : vector<16x1xf32>
    %cst_18 = arith.constant 5.000000e-01 : f32
    %56 = vector.broadcast %cst_18 : f32 to vector<16x1xf32>
    %57 = arith.mulf %56, %55 : vector<16x1xf32>
    %58 = math.tanh %57 : vector<16x1xf32>
    %cst_19 = arith.constant 1.000000e+00 : f32
    %59 = vector.broadcast %cst_19 : f32 to vector<16x1xf32>
    %60 = arith.addf %58, %59 : vector<16x1xf32>
    %cst_20 = arith.constant 5.000000e-01 : f32
    %61 = vector.broadcast %cst_20 : f32 to vector<16x1xf32>
    %62 = arith.mulf %61, %60 : vector<16x1xf32>
    %c0_21 = arith.constant 0 : index
    %c0_22 = arith.constant 0 : index
    %c0_23 = arith.constant 0 : index
    %63 = vector.load %arg2[%c0_21, %c0_22, %c0_23] : memref<1x16x256xf32, #tpu.memory_space<vmem>>, vector<1x16x256xf32>
    %64 = vector.shape_cast %63 : vector<1x16x256xf32> to vector<16x256xf32>
    %65 = vector.broadcast %62 : vector<16x1xf32> to vector<16x256xf32>
    %66 = arith.mulf %64, %65 : vector<16x256xf32>
    %c0_24 = arith.constant 0 : index
    %c0_25 = arith.constant 0 : index
    %c0_26 = arith.constant 0 : index
    %67 = vector.load %arg3[%c0_24, %c0_25, %c0_26] : memref<1x16x256xf32, #tpu.memory_space<vmem>>, vector<1x16x256xf32>
    %68 = vector.shape_cast %67 : vector<1x16x256xf32> to vector<16x256xf32>
    %69 = vector.shape_cast %66 : vector<16x256xf32> to vector<1x16x256xf32>
    tpu.vector_store %arg3[%c0_24, %c0_25, %c0_26], %69 {strides = array<i32>} : memref<1x16x256xf32, #tpu.memory_space<vmem>>, vector<1x16x256xf32>,
    return
  }
  func.func @transform_0(%arg0: i32) -> i32 {
    %c0_i32 = arith.constant 0 : i32
    %c0_i32_0 = arith.constant 0 : i32
    return %c0_i32 : i32
  }
  func.func @transform_1(%arg0: i32) -> (i32, i32, i32) {
    %c0_i32 = arith.constant 0 : i32
    %c0_i32_0 = arith.constant 0 : i32
    %c0_i32_1 = arith.constant 0 : i32
    return %arg0, %c0_i32, %c0_i32_0 : i32, i32, i32
  }
  func.func @transform_2(%arg0: i32) -> (i32, i32, i32) {
    %c0_i32 = arith.constant 0 : i32
    %c0_i32_0 = arith.constant 0 : i32
    %c0_i32_1 = arith.constant 0 : i32
    return %arg0, %c0_i32, %c0_i32_0 : i32, i32, i32
  }
}

</mosaic_0001>

<bundles_post_ra>
// kernel: tpu_custom_call.1
= control target key start
LH: loop header
LB: loop body
LE: loop exit
PB: predicated region body
PF: predicated region fallthrough
CT: control target
= control target key end

     0   :  { %7 = vsyncpa [#allocation5], 0  ;;  %s764_s0 = inlined_call_operand.hbm [shape: f32[3], index: 0, kind: input, shape index: {}]   ;;  %s765_s1 = inlined_call_operand.hbm [shape: f32[2,16,256], index: 1, kind: input, shape index: {}]   ;;  %s766_s2 = inlined_call_operand.hbm [shape: f32[2,16,256], index: 2, kind: output, shape index: {}]  }
   0x1   :  { %8 = vsyncpa [#allocation3], 0 }
   0x2   :  { %10 = vsyncpa [#allocation3 + $0x1], 0 }
   0x3   :  { %11 = vsyncpa [#allocation4], 0 }
   0x4   :  { %13 = vsyncpa [#allocation4 + $0x1], 0  ;;  %s602_s9 = smov 0   ;;  %s604_s10 = smov 0  }
   0x5   :  { %s606_s11 = smov 0   ;;  %s608_s12 = smov 0  }
   0x6 LB: > { %s623_s13 = sadd.s32 4294967295, %s579_s12   ;;  %s376_s14 = sadd.s32 4294967294, %s579_s12   ;;  %s579_s12 = sphi %s608_s12, %s777_s12   ;;  %s575_s11 = sphi %s606_s11, %s776_s11   ;;  %s571_s10 = sphi %s604_s10, %s775_s10   ;;  %s567_s9 = sphi %s602_s9, %s774_s9  }
   0x7   : > { %s627_s15 = sadd.s32 1, %s579_s12   ;;  %s47_s16 = sadd.s32 1, %s575_s11 }
   0x8   : > { %s44_s17 = ssub.s32 %s579_s12, %s627_s15  ;;  %p54_p0 = scmp.ne.s32.totalorder %s575_s11, %s571_s10 }
   0x9   : > { %p45_p1 = scmp.eq.s32.totalorder %s44_s17, 0  ;;  %p55_p2 = scmp.eq.s32.totalorder %s579_s12, 0 }
   0xa   : > { %p60_p3 = scmp.ne.s32.totalorder %s571_s10, %s567_s9  ;;  %p61_p4 = scmp.eq.s32.totalorder %s623_s13, 0 }
   0xb   : > { %s639_s18 = scalar_select %p45_p1, %s575_s11, %s47_s16  }
   0xc   : > { %p641_p5 = por %p55_p2, %p54_p0  ;;  %p647_p6 = por %p61_p4, %p60_p3 }
   0xd   : > { %p84_p7 = scmp.eq.s32.totalorder %s623_s13, 1  ;;  %p90_p8 = scmp.eq.s32.totalorder %s376_s14, 1 }
   0xe   : > { %p377_p9 = scmp.ge.s32.totalorder %s579_s12, 1  ;;  %p97_p10 = scmp.lt.s32.totalorder %s579_s12, 3 }
   0xf   : > { %p654_p11 = por %p84_p7, %p54_p0  ;;  %p658_p12 = por %p90_p8, %p60_p3 }
  0x10   : > { %p662_p13 = pnand %p377_p9, %p97_p10  ;;  %s109_s26 = sshll.u32 %s764_s0, 4  ;;  %s110_s26 = int_to_ptr.hbm [resolvable:$true] %s109_s26 }
  0x11   : > { %p417_p2 = scmp.lt.s32.totalorder %s579_s12, 2  ;;  %s120_s27 = sand.u32 1, %s575_s11  }
  0x12   : > { %p404_p1 = pneg %p662_p13  ;;  %s380_s29 = sshll.u32 %s120_s27, 5 }
  0x13   : > { %p678_p3 = pnand %p417_p2, %p641_p5  ;;  %s581_s30 = smov [#allocation2]  }
  0x14   : > { %p405_p7 = pnand %p404_p1, %p61_p4  ;;  %s394_s3 = sshll.u32 %s579_s12, 5 }
  0x15   : > { %s124_s4 = scalar_lea.vmem [#allocation6], %s380_s29  ;;  %s129_s8 = scalar_lea.hbm %s765_s1, %s394_s3 }
  0x16   : > { %407 = dma.hbm_to_smem (!%p405_p7), %s110_s26, 16, %s581_s30, [#allocation5]  }
  0x17   : > { %s132_s5 = sshll.u32 %s124_s4, 4  ;;  %s130_s14 = sshll.u32 %s129_s8, 4  ;;  %s133_s5 = int_to_ptr.vmem [resolvable:$true] %s132_s5  ;;  %s131_s14 = int_to_ptr.hbm [resolvable:$true] %s130_s14 }
  0x18   : > { %s121_s16 = scalar_lea.sflag [#allocation3], %s120_s27  ;;  %s479_s17 = sshra.s32 %s131_s14, 4  ;;  %s480_s17 = int_to_ptr.hbm [resolvable:$true] %s479_s17 }
  0x19   : > { %s481_s19 = scalar_lea.hbm %s480_s17, 32  ;;  %p483_p8 = pneg %p678_p3 }
  0x1a   : > { %p482_p5 = scmp.ne.s32.totalorder %s480_s17, %s481_s19  ;;  %s486_s26 = scalar_lea.hbm %s765_s1, 64 }
  0x1b   : > { %p487_p1 = scmp.lt.s32.totalorder %s480_s17, %s765_s1  ;;  %p488_p2 = scmp.lt.s32.totalorder %s486_s26, %s481_s19 }
  0x1c   : > { %p484_p9 = pnand %p483_p8, %p482_p5 }
  0x1d   : > { %p489_p7 = por %p488_p2, %p487_p1 }
  0x1e   : > { %p485_p10 = pneg %p484_p9 }
  0x20   : > { %p490_p0 = pnand %p489_p7, %p485_p10 }
  0x22   : > { %493 = shalt.err (!%p490_p0)
}
  0x23   : > { %s582_s27 = smov 256   ;;  %s583_s3 = smov 16  }
  0x24   : > { %411 = dma.hbm_to_vmem [thread:$0]  (!%p678_p3), %s131_s14, 512, %s133_s5, %s121_s16, %s582_s27, %s582_s27, %s583_s3  }
  0x25   : > { %144 = sbr.rel (%p662_p13) target bundleno = 331 (0x14b), region = 28 }
  0x2a   : > { %554 = dma.done.wait (%p61_p4), [#allocation5], 16  }
  0x2b   : > { %556 = vsyncadd (%p61_p4), [#allocation5], 4294967280  ;;  %s703_s4 = sand.u32 1, %s571_s10  }
  0x2c   : > { %s385_s6 = sshll.u32 %s703_s4, 5  ;;  %s152_s7 = scalar_lea.sflag [#allocation3], %s703_s4 }
  0x2d   : > { %s155_s28 = scalar_lea.vmem [#allocation6], %s385_s6 }
  0x2e   : > { %558 = dma.done.wait (%p647_p6), %s152_s7, 512  }
  0x2f   : > { %560 = vsyncadd (%p647_p6), %s152_s7, 4294966784 }
  0x30   : > { %161 = sfence }
  0x31   : > { %v713_v0 = vld [vmem:[%s155_s28] sm:$0xff]  ;;  %v715_v1 = vld [vmem:[%s155_s28 + $0x8] sm:$0xff]  ;;  %v719_v3 = vld [vmem:[%s155_s28 + $0x10] sm:$0xff]  ;;  %v584_v6 = vmov 0   ;;  %v190_v7 = vlaneseq  ;;  %s206_s20 = sld [smem:[#allocation2]]  ;;  %s395_s8 = sshll.u32 %s623_s13, 5 }
  0x32   : > { %v182_v2 = vadd.f32 %v715_v1, %v713_v0  ;;  %v721_v4 = vld [vmem:[%s155_s28 + $0x18] sm:$0xff]  ;;  %458 = vset.pattern.permute.xlu1 %v584_v6  ;;  %459 = vset.pattern.permute.xlu0 %v584_v6  ;;  %s387_s23 = sld [smem:[#allocation2 + $0x1]]  ;;  %s177_s14 = scalar_lea.vmem [#allocation7], %s385_s6 }
  0x33   : > { %v185_v5 = vadd.f32 %v721_v4, %v719_v3  ;;  %v191_v8 = vshrl.u32 %v190_v7, 7  ;;  %s388_s5 = sld [smem:[#allocation2 + $0x2]]  ;;  %s287_s19 = scalar_lea.hbm %s766_s2, %s395_s8 }
  0x34   : > { %183 = vadd.xlane.f32.xlu0 %v182_v2  ;;  %s288_s24 = sshll.u32 %s177_s14, 4  ;;  %s290_s25 = sshll.u32 %s287_s19, 4  ;;  %s289_s24 = int_to_ptr.vmem [resolvable:$true] %s288_s24  ;;  %s291_s25 = int_to_ptr.hbm [resolvable:$true] %s290_s25 }
  0x35   : > { %v192_v10 = vadd.s32 8, %v191_v8  ;;  %v198_v11 = vadd.s32 4294967295, %v191_v8  ;;  %vm195_vm0 = vcmp.lt.s32.totalorder %v191_v8, 1  ;;  %vm230_vm1 = vcmp.lt.s32.totalorder %v191_v8, 7  ;;  %s276_s13 = scalar_lea.sflag [#allocation4], %s703_s4  ;;  %s523_s26 = sshra.s32 %s291_s25, 4  ;;  %s524_s26 = int_to_ptr.hbm [resolvable:$true] %s523_s26 }
  0x36   : > { %s525_s29 = scalar_lea.hbm %s524_s26, 32  ;;  %s529_s3 = scalar_lea.hbm %s766_s2, 64 }
  0x37   : > { %v234_v12 = vadd.s32 1, %v192_v10  ;;  %v209_v15 = vstv %s206_s20  ;;  %vm200_vm2 = vcmp.ge.s32.totalorder %v198_v11, 0  ;;  %p526_p4 = scmp.ne.s32.totalorder %s524_s26, %s525_s29  ;;  %p530_p0 = scmp.lt.s32.totalorder %s524_s26, %s766_s2 }
  0x38   : > { %v223_v21 = vstv %s387_s23  ;;  %p531_p3 = scmp.lt.s32.totalorder %s529_s3, %s525_s29 }
  0x39   : > { %vm238_vm3 = vcmp.lt.s32.totalorder %v234_v12, 16  ;;  %v244_v22 = vstv %s388_s5  ;;  %p527_p6 = pnand %p526_p4, %p654_p11 }
  0x3a   : > { %p532_p5 = por %p531_p3, %p530_p0 }
  0x3b   : > { %p528_p13 = pneg %p527_p6 }
  0x3c   : > { %186 = vadd.xlane.f32.xlu0 %v185_v5 }
  0x3d   : > { %p533_p8 = pnand %p532_p5, %p528_p13 }
  0xa7   : > { %v184_v9 = vpop.xlane.xlu0 %183 }
  0xa8   : > { %v188_v13 = vmul.f32 0.00390625, %v184_v9 }
  0xaa   : > { %v193_v17 = vrot.slane %v188_v13, 7  ;;  %v228_v18 = vrot.slane %v188_v13, 1  ;;  %v224_v31 = vmul.f32 %v223_v21, %v188_v13 }
  0xaf   : > { %v187_v14 = vpop.xlane.xlu0 %186 }
  0xb0   : > { %v189_v16 = vmul.f32 0.00390625, %v187_v14 }
  0xb2   : > { %v194_v19 = vrot.slane %v189_v16, 7  ;;  %v229_v20 = vrot.slane %v189_v16, 1  ;;  %v225_v25 = vmul.f32 %v223_v21, %v189_v16 }
  0xb4   : > { %v196_v23 = vsel %vm195_vm0, %v193_v17, %v194_v19  ;;  %v197_v24 = vsel %vm195_vm0, %v194_v19, %v193_v17  ;;  %v232_v26 = vsel %vm230_vm1, %v229_v20, %v228_v18  ;;  %v231_v29 = vsel %vm230_vm1, %v228_v18, %v229_v20 }
  0xb5   : > { %v211_v27 = vmul.f32 %v209_v15, %v196_v23  ;;  %v207_v28 = vsel %vm200_vm2, %v197_v24, 0.0  ;;  %v243_v30 = vsel %vm238_vm3, %v232_v26, 0.0  ;;  %v245_v36 = vmul.f32 %v244_v22, %v231_v29 }
  0xb6   : > { %v210_v32 = vmul.f32 %v209_v15, %v207_v28  ;;  %v246_v33 = vmul.f32 %v244_v22, %v243_v30 }
  0xb7   : > { %v227_v34 = vadd.f32 %v225_v25, %v211_v27 }
  0xb8   : > { %v226_v35 = vadd.f32 %v224_v31, %v210_v32 }
  0xb9   : > { %v248_v38 = vadd.f32 %v246_v33, %v227_v34 }
  0xba   : > { %v247_v37 = vadd.f32 %v245_v36, %v226_v35 }
  0xbb   : > { %v250_v40 = vmul.f32 0.5, %v248_v38 }
  0xbc   : > { %v249_v39 = vmul.f32 0.5, %v247_v37 }
  0xbe   : > { %460 = vtanh.f32 %v249_v39 }
  0xbf   : > { %462 = vtanh.f32 %v250_v40 }
  0xc4   : > { %v461_v41 = vpop.eup %460 }
  0xc5   : > { %v253_v42 = vadd.f32 1.0, %v461_v41  ;;  %v463_v44 = vpop.eup %462 }
  0xc6   : > { %v254_v45 = vadd.f32 1.0, %v463_v44 }
  0xc7   : > { %v255_v43 = vmul.f32 0.5, %v253_v42 }
  0xc8   : > { %v256_v46 = vmul.f32 0.5, %v254_v45 }
  0xc9   : > { %259 = vperm.xlu1 %458, %v255_v43  }
  0xd1   : > { %264 = vperm.xlu1 %458, %v256_v46  }
 0x13b   : > { %v260_v47 = vpop.permute.xlu1 %259 }
 0x13c   : > { %v267_v48 = vmul.f32 %v260_v47, %v713_v0  ;;  %v268_v49 = vmul.f32 %v260_v47, %v715_v1 }
 0x13e   : > { %271 = vst [vmem:[%s177_s14] sm:$0xff] %v267_v48 }
 0x13f   : > { %272 = vst [vmem:[%s177_s14 + $0x8] sm:$0xff] %v268_v49 }
 0x143   : > { %v265_v50 = vpop.permute.xlu1 %264 }
 0x144   : > { %v269_v51 = vmul.f32 %v265_v50, %v719_v3  ;;  %v270_v52 = vmul.f32 %v265_v50, %v721_v4 }
 0x146   : > { %273 = vst [vmem:[%s177_s14 + $0x10] sm:$0xff] %v269_v51 }
 0x147   : > { %274 = vst [vmem:[%s177_s14 + $0x18] sm:$0xff] %v270_v52 }
 0x148   : > { %536 = shalt.err (!%p533_p8)
}
 0x149   : > { %s585_s4 = smov 256   ;;  %s586_s28 = smov 16  }
 0x14a   : > { %402 = dma.vmem_to_hbm [thread:$0]  (%p654_p11), %s289_s24, 512, %s291_s25, %s276_s13, %s585_s4, %s585_s4, %s586_s28  }
 0x14b PF: > { %s305_s20 = sand.u32 1, %s567_s9   ;;  %p773_p9 = scmp.ge.s32.totalorder %s579_s12, 2 }
 0x14c   : > { %s306_s23 = scalar_lea.sflag [#allocation4], %s305_s20 }
 0x14d   : > { %p413_p10 = pnand %p773_p9, %p658_p12 }
 0x14f   : > { %p414_p1 = pneg %p413_p10 }
 0x151   : > { %562 = dma.done.wait (%p414_p1), %s306_s23, 512  }
 0x152   : > { %564 = vsyncadd (%p414_p1), %s306_s23, 4294966784  ;;  %p16_p2 = scmp.ge.s32.totalorder %s627_s15, 4   ;;  %s774_s9 = smov %s571_s10 }
 0x153   : > { %s775_s10 = smov %s575_s11  ;;  %s776_s11 = smov %s639_s18 }
 0x154   : > { %s777_s12 = smov %s627_s15  ;;  %18 = sbr.rel (!%p16_p2) target bundleno = 6 (0x6), region = 78 }
 0x159   :  { %312 = vsyncpa [#allocation3], 1 }
 0x15a   :  { %314 = vsyncpa [#allocation3 + $0x1], 1 }
 0x15b   :  { %315 = vsyncpa [#allocation4], 1 }
 0x15c   :  { %317 = vsyncpa [#allocation4 + $0x1], 1 }
 0x15d   :  { %318 = vsyncpa [#allocation5], 1 }
 0x15e   :  { %320 = vsyncpa [#allocation5 + $0x1], 1 }

</bundles_post_ra>
